<compile_context>
chip_gen: v7x
topology: tpu7x:2x2x1
jax: 0.10.0
libtpu: 0.0.40
codegen_flags: <defaults>
</compile_context>

<pallas_src>
import jax
import jax.numpy as jnp
from jax.experimental import pallas as pl
from jax.experimental.pallas import tpu as pltpu


def _round_up(x, m):
    return (x + m - 1) // m * m


def _vmem_capacity_bytes():
    """Per-core VMEM capacity (128 MiB v5e/v6e, 64 MiB/TC v7x); conservative fallback."""
    try:
        return int(pltpu.get_tpu_info().vmem_capacity_bytes)
    except Exception:
        return 64 << 20


# ---------------------------------------------------------------------------
# Kernels
# ---------------------------------------------------------------------------
def _sw_net_resident_kernel(x_ref, w1_ref, b1_ref, w2_ref, b2_ref, w3_ref, b3_ref, o_ref):
    """Full 3-layer MLP for one batch tile; all weights VMEM-resident (single-buffered)."""
    cdt = w1_ref.dtype
    x = x_ref[...].astype(cdt)                       # cast to compute dtype in-kernel

    h1 = jnp.dot(x, w1_ref[...], preferred_element_type=jnp.float32)
    h1 = jnp.maximum(h1 + b1_ref[...], 0.0).astype(cdt)   # f32 epilogue, cast for MXU

    h2 = jnp.dot(h1, w2_ref[...], preferred_element_type=jnp.float32)
    h2 = jnp.maximum(h2 + b2_ref[...], 0.0).astype(cdt)

    out = jnp.dot(h2, w3_ref[...], preferred_element_type=jnp.float32) + b3_ref[...]
    o_ref[...] = out.astype(o_ref.dtype)


def _sw_net_streamed_kernel(x_ref, w1_ref, b1_ref, w2_ref, b2_ref, w3_ref, b3_ref,
                            o_ref, h1_ref, acc_ref):
    """Large-H path: stream w2 column panels / w3 row panels along an 'arbitrary' axis.

    h1 (layer-1 output) is computed once per batch tile and kept in VMEM scratch; the
    layer-3 product accumulates in an f32 scratch and is written out on the last panel.
    """
    cdt = w1_ref.dtype
    j = pl.program_id(1)

    @pl.when(j == 0)
    def _():
        x = x_ref[...].astype(cdt)
        h1 = jnp.dot(x, w1_ref[...], preferred_element_type=jnp.float32)
        h1_ref[...] = jnp.maximum(h1 + b1_ref[...], 0.0).astype(h1_ref.dtype)
        acc_ref[...] = jnp.zeros_like(acc_ref)

    h2 = jnp.dot(h1_ref[...], w2_ref[...], preferred_element_type=jnp.float32)
    h2 = jnp.maximum(h2 + b2_ref[...], 0.0).astype(cdt)
    acc_ref[...] += jnp.dot(h2, w3_ref[...], preferred_element_type=jnp.float32)

    @pl.when(j == pl.num_programs(1) - 1)
    def _():
        o_ref[...] = (acc_ref[...] + b3_ref[...]).astype(o_ref.dtype)


# ---------------------------------------------------------------------------
# Wrapper
# ---------------------------------------------------------------------------
def prepare_sw_net_params(params, *, compute_dtype=jnp.bfloat16):
    """One-time pad/cast of weights, hoisted out of the forward path.

    Weights are stored (in, out).  Only output feature dims are padded to 128 lanes
    (exact: padded biases are zero, so padded hidden units stay 0 after ReLU); w1's
    input dim stays at the true din so x never needs host-side padding.
    """
    cdt = jnp.dtype(compute_dtype)
    w1, w2, w3 = params["w1"], params["w2"], params["w3"]
    din, H = w1.shape
    dout = w3.shape[1]
    H_p = _round_up(H, 128)
    dout_p = _round_up(dout, 128)

    def padc(a, rows, cols, dt):
        a = jnp.asarray(a)
        return jnp.pad(a, ((0, rows - a.shape[0]), (0, cols - a.shape[1]))).astype(dt)

    def bias2d(b):
        return jnp.asarray(b).reshape(1, -1)

    return {
        "w1": padc(w1, din, H_p, cdt),
        "b1": padc(bias2d(params["b1"]), 1, H_p, jnp.float32),
        "w2": padc(w2, H_p, H_p, cdt),
        "b2": padc(bias2d(params["b2"]), 1, H_p, jnp.float32),
        "w3": padc(w3, H_p, dout_p, cdt),
        "b3": padc(bias2d(params["b3"]), 1, dout_p, jnp.float32),
        "dims": (din, H, dout, H_p, dout_p),
        "compute_dtype": cdt,
    }


def sw_net_forward(x, prep, *, batch_tile=256, out_dtype=jnp.float32, force_streamed=None):
    """x: (B, din). prep: output of prepare_sw_net_params. Returns (B, dout) out_dtype."""
    din, H, dout, H_p, dout_p = prep["dims"]
    cdt = prep["compute_dtype"]
    cb = cdt.itemsize
    ob = jnp.dtype(out_dtype).itemsize
    xb = jnp.dtype(x.dtype).itemsize
    B = x.shape[0]
    assert x.shape == (B, din), f"expected x shape (B, {din}), got {x.shape}"

    vmem_cap = _vmem_capacity_bytes()
    vmem_max = int(vmem_cap * 0.88)          # leave headroom for Mosaic scratch / spills

    # Batch tile: enough grid steps to pipeline x/out DMAs (and feed both v7x cores),
    # but keep the MXU M-dim tile >= 128 when B allows.  Sublane-aligned.
    sub = 16 if cb == 2 else 8
    bt = min(batch_tile, max(128, pl.cdiv(B, 8)))
    bt = min(bt, _round_up(B, sub))
    bt = max(sub, _round_up(bt, sub))
    grid_m = pl.cdiv(B, bt)

    def resident():
        return pl.BlockSpec(memory_space=pltpu.MemorySpace.VMEM)

    # Each (1, X) f32 bias pads to an (8, lanes) sublane tile once resident in VMEM.
    bias_bytes = 3 * 8 * max(H_p, dout_p) * 4
    weight_bytes = (din * H_p + H_p * H_p + H_p * dout_p) * cb

    flops = 2 * B * (din * H_p + H_p * H_p + H_p * dout_p)
    cost = pl.CostEstimate(
        flops=flops, transcendentals=0,
        bytes_accessed=B * din * xb + weight_bytes + B * dout_p * ob)

    # ---- resident-weights footprint & path selection ------------------------------
    resident_need = int(1.3 * (
        weight_bytes + bias_bytes
        + 2 * bt * din * xb + 2 * bt * dout_p * ob           # double-buffered x / out tiles
        + bt * H_p * (2 * 4 + 2 * cb)                        # h1/h2 f32 + compute-dtype copies
    )) + (2 << 20)
    use_streamed = (resident_need > int(0.6 * vmem_cap)) if force_streamed is None \
        else bool(force_streamed)

    if not use_streamed:
        vmem_limit = int(min(max(resident_need, 16 << 20), vmem_max))
        out_p = pl.pallas_call(
            _sw_net_resident_kernel,
            out_shape=jax.ShapeDtypeStruct((B, dout_p), out_dtype),
            grid_spec=pltpu.PrefetchScalarGridSpec(
                num_scalar_prefetch=0,
                grid=(grid_m,),
                in_specs=[
                    pl.BlockSpec((bt, din), lambda i: (i, 0)),   # x tile (pipelined)
                    resident(), resident(),                      # w1, b1
                    resident(), resident(),                      # w2, b2
                    resident(), resident(),                      # w3, b3
                ],
                out_specs=pl.BlockSpec((bt, dout_p), lambda i: (i, 0)),
            ),
            compiler_params=pltpu.CompilerParams(
                dimension_semantics=("parallel",),   # batch axis -> megacore on v7x
                vmem_limit_bytes=vmem_limit,
            ),
            cost_estimate=cost,
        )(x, prep["w1"], prep["b1"], prep["w2"], prep["b2"], prep["w3"], prep["b3"])
        return out_p[:, :dout]

    # ---- streamed-K path: pick the largest panel width dividing H_p that fits VMEM --
    def streamed_need(tk):
        return int(1.3 * (
            din * H_p * cb + bias_bytes                            # resident w1 + biases
            + 2 * (bt * din * xb + H_p * tk * cb + 8 * tk * 4
                   + tk * dout_p * cb + bt * dout_p * ob)          # double-buffered panels/tiles
            + bt * H_p * cb + bt * dout_p * 4                      # h1 / acc scratch
            + bt * tk * (4 + cb)                                   # h2 intermediate
        )) + (2 << 20)

    tk = 128
    for cand in (1024, 512, 256, 128):
        if H_p % cand == 0 and streamed_need(cand) <= vmem_max:
            tk = cand
            break
    vmem_limit = int(min(max(streamed_need(tk), 16 << 20), vmem_max))

    out_p = pl.pallas_call(
        _sw_net_streamed_kernel,
        out_shape=jax.ShapeDtypeStruct((B, dout_p), out_dtype),
        grid_spec=pltpu.PrefetchScalarGridSpec(
            num_scalar_prefetch=0,
            grid=(grid_m, H_p // tk),
            in_specs=[
                pl.BlockSpec((bt, din), lambda i, j: (i, 0)),      # x (re-fetched per i only)
                resident(), resident(),                            # w1, b1 (VMEM-resident)
                pl.BlockSpec((H_p, tk), lambda i, j: (0, j)),      # w2 column panel (pipelined)
                pl.BlockSpec((1, tk), lambda i, j: (0, j)),        # b2 panel
                pl.BlockSpec((tk, dout_p), lambda i, j: (j, 0)),   # w3 row panel (pipelined)
                resident(),                                        # b3
            ],
            out_specs=pl.BlockSpec((bt, dout_p), lambda i, j: (i, 0)),
            scratch_shapes=[
                pltpu.VMEM((bt, H_p), cdt),             # h1 (layer-1 output, per batch tile)
                pltpu.VMEM((bt, dout_p), jnp.float32),  # layer-3 f32 accumulator
            ],
        ),
        compiler_params=pltpu.CompilerParams(
            dimension_semantics=("parallel", "arbitrary"),
            vmem_limit_bytes=vmem_limit,
        ),
        cost_estimate=cost,
    )(x, prep["w1"], prep["b1"], prep["w2"], prep["b2"], prep["w3"], prep["b3"])
    return out_p[:, :dout]


# ---------------------------------------------------------------------------
# Init + reference (torch.nn.Linear semantics) and self-test
# ---------------------------------------------------------------------------
def init_sw_net_params(key, din, dout, n_hidden):
    """torch.nn.Linear-style init U(-1/sqrt(fan_in), +1/sqrt(fan_in)); weights (in, out)."""
    ks = jax.random.split(key, 6)

    def linear(kw, kb, fan_in, fan_out):
        bound = 1.0 / jnp.sqrt(fan_in)
        w = jax.random.uniform(kw, (fan_in, fan_out), jnp.float32, -bound, bound)
        b = jax.random.uniform(kb, (1, fan_out), jnp.float32, -bound, bound)
        return w, b

    w1, b1 = linear(ks[0], ks[1], din, n_hidden)
    w2, b2 = linear(ks[2], ks[3], n_hidden, n_hidden)
    w3, b3 = linear(ks[4], ks[5], n_hidden, dout)
    return {"w1": w1, "b1": b1, "w2": w2, "b2": b2, "w3": w3, "b3": b3}


def sw_net_reference(x, p):
    hp = jax.lax.Precision.HIGHEST
    h1 = jnp.maximum(jnp.dot(x, p["w1"], precision=hp) + p["b1"], 0.0)
    h2 = jnp.maximum(jnp.dot(h1, p["w2"], precision=hp) + p["b2"], 0.0)
    return jnp.dot(h2, p["w3"], precision=hp) + p["b3"]


if __name__ == "__main__":
    key = jax.random.PRNGKey(0)
    k_params, k_x = jax.random.split(key)

    # Small logical shapes consistent with SW_net(din, dout, n_hidden); batch large
    # enough to exercise a multi-step grid (pipelining / megacore split).
    B, din, dout, n_hidden = 512, 16, 4, 32

    params = init_sw_net_params(k_params, din, dout, n_hidden)
    x = jax.random.normal(k_x, (B, din), dtype=jnp.float32)
    ref = sw_net_reference(x, params)

    # f32 compute path (resident weights): tight check.
    prep_f32 = prepare_sw_net_params(params, compute_dtype=jnp.float32)
    out_f32 = jax.block_until_ready(sw_net_forward(x, prep_f32, out_dtype=jnp.float32))
    assert out_f32.shape == (B, dout)
    assert jnp.allclose(out_f32, ref, atol=1e-3, rtol=1e-3), "f32 resident kernel mismatch"

    # f32 compute, streamed-K path forced (exercises the large-H code path): tight check.
    out_f32_s = jax.block_until_ready(
        sw_net_forward(x, prep_f32, out_dtype=jnp.float32, force_streamed=True))
    assert out_f32_s.shape == (B, dout)
    assert jnp.allclose(out_f32_s, ref, atol=1e-3, rtol=1e-3), "f32 streamed kernel mismatch"

    # bf16 MXU path (perf config), f32 output: ~1e-2 level drift expected.
    prep_bf16 = prepare_sw_net_params(params, compute_dtype=jnp.bfloat16)
    out_bf16 = jax.block_until_ready(sw_net_forward(x, prep_bf16, out_dtype=jnp.float32))
    assert out_bf16.shape == (B, dout)
    assert jnp.allclose(out_bf16, ref, atol=1.5e-1, rtol=1e-1), "bf16 kernel drift too large"

    # bf16 compute + bf16 output (halves the out-tile writeback).
    out_bf16o = jax.block_until_ready(sw_net_forward(x, prep_bf16, out_dtype=jnp.bfloat16))
    assert out_bf16o.shape == (B, dout)
    assert jnp.allclose(out_bf16o.astype(jnp.float32), ref, atol=2e-1, rtol=1e-1), \
        "bf16-out kernel drift too large"

    print("KERNEL_OK")
</pallas_src>

<mosaic_0001>
module attributes {stable_mosaic.version = 11 : i64} {
  func.func @_sw_net_resident_kernel(%arg0: i32, %arg1: memref<128x16xf32, #tpu.memory_space<vmem>>, %arg2: memref<16x128xf32, #tpu.memory_space<vmem>>, %arg3: memref<1x128xf32, #tpu.memory_space<vmem>>, %arg4: memref<128x128xf32, #tpu.memory_space<vmem>>, %arg5: memref<1x128xf32, #tpu.memory_space<vmem>>, %arg6: memref<128x128xf32, #tpu.memory_space<vmem>>, %arg7: memref<1x128xf32, #tpu.memory_space<vmem>>, %arg8: memref<128x128xf32, #tpu.memory_space<vmem>>) attributes {dimension_semantics = [#tpu.dimension_semantics<parallel>], iteration_bounds = array<i64: 4>, scalar_prefetch = 0 : i64, scratch_operands = 0 : i64, tpu.core_type = #tpu.core_type<tc>, window_params = [{transform_indices = @transform_0, window_bounds = array<i64: 128, 16>}, {pipeline_mode = #tpu.pipeline_mode<synchronous>, transform_indices = @transform_1, window_bounds = array<i64: 16, 128>}, {pipeline_mode = #tpu.pipeline_mode<synchronous>, transform_indices = @transform_2, window_bounds = array<i64: 1, 128>}, {pipeline_mode = #tpu.pipeline_mode<synchronous>, transform_indices = @transform_3, window_bounds = array<i64: 128, 128>}, {pipeline_mode = #tpu.pipeline_mode<synchronous>, transform_indices = @transform_4, window_bounds = array<i64: 1, 128>}, {pipeline_mode = #tpu.pipeline_mode<synchronous>, transform_indices = @transform_5, window_bounds = array<i64: 128, 128>}, {pipeline_mode = #tpu.pipeline_mode<synchronous>, transform_indices = @transform_6, window_bounds = array<i64: 1, 128>}, {transform_indices = @transform_7, window_bounds = array<i64: 128, 128>}]} {
    %c0 = arith.constant 0 : index
    %c0_0 = arith.constant 0 : index
    %0 = vector.load %arg1[%c0, %c0_0] : memref<128x16xf32, #tpu.memory_space<vmem>>, vector<128x16xf32>
    %c0_1 = arith.constant 0 : index
    %c0_2 = arith.constant 0 : index
    %1 = vector.load %arg2[%c0_1, %c0_2] : memref<16x128xf32, #tpu.memory_space<vmem>>, vector<16x128xf32>
    %cst = arith.constant dense<0.000000e+00> : vector<128x128xf32>
    %2 = tpu.matmul %0, %1, %cst {dimension_numbers = #tpu.dot_dimension_numbers<[1], [0], [0], [1], [0, 0, 1, 1], [], []>} : vector<128x16xf32>, vector<16x128xf32>, vector<128x128xf32> -> vector<128x128xf32>
    %c0_3 = arith.constant 0 : index
    %c0_4 = arith.constant 0 : index
    %3 = vector.load %arg3[%c0_3, %c0_4] : memref<1x128xf32, #tpu.memory_space<vmem>>, vector<1x128xf32>
    %4 = vector.broadcast %3 : vector<1x128xf32> to vector<128x128xf32>
    %5 = arith.addf %2, %4 : vector<128x128xf32>
    %cst_5 = arith.constant 0.000000e+00 : f32
    %6 = vector.broadcast %cst_5 : f32 to vector<128x128xf32>
    %7 = arith.maximumf %5, %6 : vector<128x128xf32>
    %c0_6 = arith.constant 0 : index
    %c0_7 = arith.constant 0 : index
    %8 = vector.load %arg4[%c0_6, %c0_7] : memref<128x128xf32, #tpu.memory_space<vmem>>, vector<128x128xf32>
    %cst_8 = arith.constant dense<0.000000e+00> : vector<128x128xf32>
    %9 = tpu.matmul %7, %8, %cst_8 {dimension_numbers = #tpu.dot_dimension_numbers<[1], [0], [0], [1], [0, 0, 1, 1], [], []>} : vector<128x128xf32>, vector<128x128xf32>, vector<128x128xf32> -> vector<128x128xf32>
    %c0_9 = arith.constant 0 : index
    %c0_10 = arith.constant 0 : index
    %10 = vector.load %arg5[%c0_9, %c0_10] : memref<1x128xf32, #tpu.memory_space<vmem>>, vector<1x128xf32>
    %11 = vector.broadcast %10 : vector<1x128xf32> to vector<128x128xf32>
    %12 = arith.addf %9, %11 : vector<128x128xf32>
    %cst_11 = arith.constant 0.000000e+00 : f32
    %13 = vector.broadcast %cst_11 : f32 to vector<128x128xf32>
    %14 = arith.maximumf %12, %13 : vector<128x128xf32>
    %c0_12 = arith.constant 0 : index
    %c0_13 = arith.constant 0 : index
    %15 = vector.load %arg6[%c0_12, %c0_13] : memref<128x128xf32, #tpu.memory_space<vmem>>, vector<128x128xf32>
    %cst_14 = arith.constant dense<0.000000e+00> : vector<128x128xf32>
    %16 = tpu.matmul %14, %15, %cst_14 {dimension_numbers = #tpu.dot_dimension_numbers<[1], [0], [0], [1], [0, 0, 1, 1], [], []>} : vector<128x128xf32>, vector<128x128xf32>, vector<128x128xf32> -> vector<128x128xf32>
    %c0_15 = arith.constant 0 : index
    %c0_16 = arith.constant 0 : index
    %17 = vector.load %arg7[%c0_15, %c0_16] : memref<1x128xf32, #tpu.memory_space<vmem>>, vector<1x128xf32>
    %18 = vector.broadcast %17 : vector<1x128xf32> to vector<128x128xf32>
    %19 = arith.addf %16, %18 : vector<128x128xf32>
    %c0_17 = arith.constant 0 : index
    %c0_18 = arith.constant 0 : index
    %20 = vector.load %arg8[%c0_17, %c0_18] : memref<128x128xf32, #tpu.memory_space<vmem>>, vector<128x128xf32>
    tpu.vector_store %arg8[%c0_17, %c0_18], %19 {strides = array<i32>} : memref<128x128xf32, #tpu.memory_space<vmem>>, vector<128x128xf32>,
    return
  }
  func.func @transform_0(%arg0: i32) -> (i32, i32) {
    %c0_i32 = arith.constant 0 : i32
    %c0_i32_0 = arith.constant 0 : i32
    return %arg0, %c0_i32 : i32, i32
  }
  func.func @transform_1(%arg0: i32) -> (i32, i32) {
    %c0_i32 = arith.constant 0 : i32
    %c0_i32_0 = arith.constant 0 : i32
    %c0_i32_1 = arith.constant 0 : i32
    return %c0_i32, %c0_i32_0 : i32, i32
  }
  func.func @transform_2(%arg0: i32) -> (i32, i32) {
    %c0_i32 = arith.constant 0 : i32
    %c0_i32_0 = arith.constant 0 : i32
    %c0_i32_1 = arith.constant 0 : i32
    return %c0_i32, %c0_i32_0 : i32, i32
  }
  func.func @transform_3(%arg0: i32) -> (i32, i32) {
    %c0_i32 = arith.constant 0 : i32
    %c0_i32_0 = arith.constant 0 : i32
    %c0_i32_1 = arith.constant 0 : i32
    return %c0_i32, %c0_i32_0 : i32, i32
  }
  func.func @transform_4(%arg0: i32) -> (i32, i32) {
    %c0_i32 = arith.constant 0 : i32
    %c0_i32_0 = arith.constant 0 : i32
    %c0_i32_1 = arith.constant 0 : i32
    return %c0_i32, %c0_i32_0 : i32, i32
  }
  func.func @transform_5(%arg0: i32) -> (i32, i32) {
    %c0_i32 = arith.constant 0 : i32
    %c0_i32_0 = arith.constant 0 : i32
    %c0_i32_1 = arith.constant 0 : i32
    return %c0_i32, %c0_i32_0 : i32, i32
  }
  func.func @transform_6(%arg0: i32) -> (i32, i32) {
    %c0_i32 = arith.constant 0 : i32
    %c0_i32_0 = arith.constant 0 : i32
    %c0_i32_1 = arith.constant 0 : i32
    return %c0_i32, %c0_i32_0 : i32, i32
  }
  func.func @transform_7(%arg0: i32) -> (i32, i32) {
    %c0_i32 = arith.constant 0 : i32
    %c0_i32_0 = arith.constant 0 : i32
    return %arg0, %c0_i32 : i32, i32
  }
}

</mosaic_0001>

<bundles_post_ra>
// kernel: tpu_custom_call.1
= control target key start
LH: loop header
LB: loop body
LE: loop exit
PB: predicated region body
PF: predicated region fallthrough
CT: control target
= control target key end

     0   :  { %12 = vsyncpa [#allocation3], 0  ;;  %s1699_s0 = inlined_call_operand.vmem [shape: f32[512,16], index: 0, kind: input, shape index: {}]   ;;  %s1700_s1 = inlined_call_operand.vmem [shape: f32[16,128], index: 1, kind: input, shape index: {}]   ;;  %s1701_s2 = inlined_call_operand.vmem [shape: f32[1,128], index: 2, kind: input, shape index: {}]   ;;  %s1702_s3 = inlined_call_operand.vmem [shape: f32[128,128], index: 3, kind: input, shape index: {}]   ;;  %s1703_s4 = inlined_call_operand.vmem [shape: f32[1,128], index: 4, kind: input, shape index: {}]   ;;  %s1704_s5 = inlined_call_operand.vmem [shape: f32[128,128], index: 5, kind: input, shape index: {}]   ;;  %s1705_s6 = inlined_call_operand.vmem [shape: f32[1,128], index: 6, kind: input, shape index: {}]   ;;  %s1706_s7 = inlined_call_operand.hbm [shape: f32[512,128], index: 7, kind: output, shape index: {}]  }
   0x1   :  { %14 = vsyncpa [#allocation3 + $0x1], 0  ;;  %s1429_s24 = smov 0   ;;  %s1431_s25 = smov 0  }
   0x2   :  { %s1433_s26 = smov 0   ;;  %s1435_s27 = smov 0  }
   0x3 LB: > { %s1450_s28 = sadd.s32 4294967295, %s1384_s27   ;;  %s959_s29 = sadd.s32 4294967294, %s1384_s27   ;;  %s1384_s27 = sphi %s1435_s27, %s1712_s27   ;;  %s1380_s26 = sphi %s1433_s26, %s1711_s26   ;;  %s1376_s25 = sphi %s1431_s25, %s1710_s25   ;;  %s1372_s24 = sphi %s1429_s24, %s1709_s24  }
   0x4   : > { %s1454_s30 = sadd.s32 1, %s1384_s27   ;;  %s179_s8 = sadd.s32 1, %s1380_s26 }
   0x5   : > { %s176_s9 = ssub.s32 %s1384_s27, %s1454_s30  ;;  %p189_p0 = scmp.ne.s32.totalorder %s1380_s26, %s1376_s25 }
   0x6   : > { %p177_p1 = scmp.eq.s32.totalorder %s176_s9, 0  ;;  %p190_p2 = scmp.eq.s32.totalorder %s1450_s28, 3 }
   0x7   : > { %p195_p3 = scmp.ne.s32.totalorder %s1376_s25, %s1372_s24  ;;  %p196_p4 = scmp.eq.s32.totalorder %s959_s29, 3 }
   0x8   : > { %s1465_s10 = scalar_select %p177_p1, %s1380_s26, %s179_s8  }
   0x9   : > { %p1467_p5 = por %p190_p2, %p189_p0  ;;  %p1471_p6 = por %p196_p4, %p195_p3 }
   0xa   : > { %p962_p7 = scmp.ge.s32.totalorder %s1384_s27, 1  ;;  %p241_p8 = scmp.lt.s32.totalorder %s1384_s27, 5 }
   0xc   : > { %p242_p9 = pnand %p962_p7, %p241_p8 }
   0xd   : > { %v296_v0 = vld [vmem:[%s1700_s1] sm:$0xff] (!%p242_p9)  ;;  %v297_v1 = vld [vmem:[%s1700_s1 + $0x8] sm:$0xff] (!%p242_p9)  ;;  %s964_s17 = sshll.u32 (!%p242_p9), %s1450_s28, 4  ;;  %v517_v5 = vld [vmem:[%s1702_s3 + $0x10] sm:$0xff] (!%p242_p9)  ;;  %vm305_vm0 = vcmask (!%p242_p9), 130048   ;;  %s270_s22 = sand.u32 (!%p242_p9), 1, %s1376_s25  }
   0xe   : > { %245 = sbr.rel (%p242_p9) target bundleno = 720 (0x2d0), region = 48  ;;  %v515_v2 = vld [vmem:[%s1702_s3] sm:$0xff] (!%p242_p9)  ;;  %v1213_v3 = vpack.c.bf16 (!%p242_p9), %v297_v1, %v296_v0  ;;  %p274_p10 = scmp.lt.s32.totalorder (!%p242_p9), %s964_s17, 63  ;;  %v516_v4 = vld [vmem:[%s1702_s3 + $0x8] sm:$0xff] (!%p242_p9)  ;;  %v518_v6 = vld [vmem:[%s1702_s3 + $0x18] sm:$0xff] (!%p242_p9) }
   0xf   : > { %v1217_v7 = vpack.c.bf16 (!%p242_p9), %v516_v4, %v515_v2  ;;  %v1221_v8 = vpack.c.bf16 (!%p242_p9), %v518_v6, %v517_v5  ;;  %v519_v9 = vld [vmem:[%s1702_s3 + $0x20] sm:$0xff] (!%p242_p9)  ;;  %v520_v10 = vld [vmem:[%s1702_s3 + $0x28] sm:$0xff] (!%p242_p9)  ;;  %v521_v12 = vld [vmem:[%s1702_s3 + $0x30] sm:$0xff] (!%p242_p9)  ;;  %s963_s23 = sshll.u32 (!%p242_p9), %s270_s22, 7  ;;  %s990_s9 = sshll.u32 (!%p242_p9), %s1450_s28, 11 }
  0x10   : > { %1214 = vmatprep.subr.bf16.mxu0 (!%p242_p9), %v1213_v3  ;;  %v1225_v11 = vpack.c.bf16 (!%p242_p9), %v520_v10, %v519_v9  ;;  %v522_v13 = vld [vmem:[%s1702_s3 + $0x38] sm:$0xff] (!%p242_p9)  ;;  %v523_v20 = vld [vmem:[%s1702_s3 + $0x40] sm:$0xff] (!%p242_p9)  ;;  %v524_v21 = vld [vmem:[%s1702_s3 + $0x48] sm:$0xff] (!%p242_p9)  ;;  %s1629_s8 = scalar_lea.vmem (!%p242_p9), [#allocation2], %s963_s23  ;;  %s1658_s28 = scalar_lea.sflag (!%p242_p9), [#allocation3], %s270_s22 }
  0x11   : > { %1216 = vmatpush3.bf16.msra.mxu0 (!%p242_p9), %v1213_v3  ;;  %1218 = vmatprep.subr.bf16.mxu1 (!%p242_p9), %v1217_v7  ;;  %v1229_v18 = vpack.c.bf16 (!%p242_p9), %v522_v13, %v521_v12  ;;  %v1233_v23 = vpack.c.bf16 (!%p242_p9), %v524_v21, %v523_v20  ;;  %v525_v25 = vld [vmem:[%s1702_s3 + $0x50] sm:$0xff] (!%p242_p9)  ;;  %v526_v26 = vld [vmem:[%s1702_s3 + $0x58] sm:$0xff] (!%p242_p9)  ;;  %v527_v30 = vld [vmem:[%s1702_s3 + $0x60] sm:$0xff] (!%p242_p9)  ;;  %s897_s13 = sshll.u32 (!%p242_p9), %s1629_s8, 4  ;;  %s1386_s18 = smov (!%p242_p9), [#allocation2]   ;;  %s1652_s13 = int_to_ptr.vmem [resolvable:$true] %s897_s13 }
  0x12   : > { %1220 = vmatpush3.bf16.msra.mxu1 (!%p242_p9), %v1217_v7  ;;  %v1237_v28 = vpack.c.bf16 (!%p242_p9), %v526_v26, %v525_v25  ;;  %v528_v31 = vld [vmem:[%s1702_s3 + $0x68] sm:$0xff] (!%p242_p9)  ;;  %v529_v40 = vld [vmem:[%s1702_s3 + $0x70] sm:$0xff] (!%p242_p9)  ;;  %v530_v41 = vld [vmem:[%s1702_s3 + $0x78] sm:$0xff] (!%p242_p9)  ;;  %s1326_s19 = sshll.u32 (!%p242_p9), %s1386_s18, 4  ;;  %s1327_s19 = int_to_ptr.vmem [resolvable:$false] %s1326_s19 }
  0x13   : > { %1222 = vmatprep.subr.bf16.mxu1 (!%p242_p9), %v1221_v8  ;;  %v1241_v33 = vpack.c.bf16 (!%p242_p9), %v528_v31, %v527_v30  ;;  %v1245_v42 = vpack.c.bf16 (!%p242_p9), %v530_v41, %v529_v40  ;;  %v699_v43 = vld [vmem:[%s1704_s5] sm:$0xff] (!%p242_p9)  ;;  %v700_v44 = vld [vmem:[%s1704_s5 + $0x8] sm:$0xff] (!%p242_p9)  ;;  %v701_v45 = vld [vmem:[%s1704_s5 + $0x10] sm:$0xff] (!%p242_p9)  ;;  %s1328_s21 = scalar_lea.vmem (!%p242_p9), %s1327_s19, 4096  ;;  %p1329_p0 = scmp.lt.s32.totalorder (!%p242_p9), %s1652_s13, %s1327_s19 }
  0x14   : > { %v1249_v46 = vpack.c.bf16 (!%p242_p9), %v700_v44, %v699_v43  ;;  %v702_v47 = vld [vmem:[%s1704_s5 + $0x18] sm:$0xff] (!%p242_p9)  ;;  %v703_v49 = vld [vmem:[%s1704_s5 + $0x20] sm:$0xff] (!%p242_p9)  ;;  %v704_v50 = vld [vmem:[%s1704_s5 + $0x28] sm:$0xff] (!%p242_p9) }
  0x15   : > { %s1714_s17 = smov (!%p274_p10, %s964_s17), 63  ;;  %v1253_v48 = vpack.c.bf16 %v702_v47, %v701_v45  ;;  %v1257_v51 = vpack.c.bf16 %v704_v50, %v703_v49  ;;  %v705_v52 = vld [vmem:[%s1704_s5 + $0x30] sm:$0xff]  ;;  %v706_v53 = vld [vmem:[%s1704_s5 + $0x38] sm:$0xff]  ;;  %v707_v55 = vld [vmem:[%s1704_s5 + $0x40] sm:$0xff] }
  0x16   : > { %s965_s16 = sshll.u32 %s1714_s17, 3  ;;  %1224 = vmatpush3.bf16.msra.mxu1 %v1221_v8  ;;  %1250 = vmatprep.subr.bf16.mxu0 %v1249_v46  ;;  %v1261_v54 = vpack.c.bf16 %v706_v53, %v705_v52  ;;  %v708_v56 = vld [vmem:[%s1704_s5 + $0x48] sm:$0xff]  ;;  %v709_v58 = vld [vmem:[%s1704_s5 + $0x50] sm:$0xff]  ;;  %v710_v59 = vld [vmem:[%s1704_s5 + $0x58] sm:$0xff] }
  0x17   : > { %s1505_s20 = scalar_lea.vmem %s1699_s0, %s965_s16  ;;  %1226 = vmatprep.subr.bf16.mxu1 %v1225_v11  ;;  %v1265_v57 = vpack.c.bf16 %v708_v56, %v707_v55  ;;  %v1269_v60 = vpack.c.bf16 %v710_v59, %v709_v58  ;;  %v711_v61 = vld [vmem:[%s1704_s5 + $0x60] sm:$0xff]  ;;  %v712_v62 = vld [vmem:[%s1704_s5 + $0x68] sm:$0xff]  ;;  %v713_v49 = vld [vmem:[%s1704_s5 + $0x70] sm:$0xff]  ;;  %s1650_s16 = scalar_lea.hbm %s1706_s7, %s990_s9 }
  0x18   : > { %v280_v14 = vld [vmem:[%s1505_s20] sm:$0xff]  ;;  %v281_v15 = vld [vmem:[%s1505_s20 + $0x8] sm:$0xff]  ;;  %v282_v16 = vld [vmem:[%s1505_s20 + $0x10] sm:$0xff]  ;;  %v1273_v63 = vpack.c.bf16 %v712_v62, %v711_v61 }
  0x19   : > { %1077 = vmatprep.mubr.msk.f32.mxu0 %vm305_vm0, %v280_v14  ;;  %v283_v17 = vld [vmem:[%s1505_s20 + $0x18] sm:$0xff]  ;;  %v284_v19 = vld [vmem:[%s1505_s20 + $0x20] sm:$0xff]  ;;  %v285_v22 = vld [vmem:[%s1505_s20 + $0x28] sm:$0xff] }
  0x1a   : > { %1078 = vmatmul.mubr.msk.f32.vlgmr.msra.gmra.mrb[0].mxu0 %vm305_vm0, %v281_v15  ;;  %1228 = vmatpush3.bf16.msra.mxu1 %v1225_v11  ;;  %v286_v24 = vld [vmem:[%s1505_s20 + $0x30] sm:$0xff]  ;;  %v287_v27 = vld [vmem:[%s1505_s20 + $0x38] sm:$0xff]  ;;  %v288_v29 = vld [vmem:[%s1505_s20 + $0x40] sm:$0xff] }
  0x1b   : > { %1080 = vmatprep.mubr.msk.f32.mxu0 %vm305_vm0, %v282_v16  ;;  %1230 = vmatprep.subr.bf16.mxu1 %v1229_v18  ;;  %v289_v32 = vld [vmem:[%s1505_s20 + $0x48] sm:$0xff]  ;;  %v290_v34 = vld [vmem:[%s1505_s20 + $0x50] sm:$0xff]  ;;  %v291_v35 = vld [vmem:[%s1505_s20 + $0x58] sm:$0xff] }
  0x1c   : > { %v292_v36 = vld [vmem:[%s1505_s20 + $0x60] sm:$0xff]  ;;  %v293_v37 = vld [vmem:[%s1505_s20 + $0x68] sm:$0xff]  ;;  %v294_v38 = vld [vmem:[%s1505_s20 + $0x70] sm:$0xff]  ;;  %1252 = vmatpush3.bf16.msra.mxu0 %v1249_v46 }
  0x1d   : > { %v295_v39 = vld [vmem:[%s1505_s20 + $0x78] sm:$0xff]  ;;  %1254 = vmatprep.subr.bf16.mxu0 %v1253_v48  ;;  %v966_v0 = vld [vmem:[%s1701_s2] ss:$0 sm:$0xff]  ;;  %s1322_s20 = scalar_lea.vmem %s1652_s13, 2048 }
  0x1e   : > { %1081 = vmatmul.mubr.msk.f32.gmra.mrb[2].mxu0 %vm305_vm0, %v283_v17  ;;  %1232 = vmatpush3.bf16.msra.mxu1 %v1229_v18  ;;  %v714_v50 = vld [vmem:[%s1704_s5 + $0x78] sm:$0xff]  ;;  %v983_v52 = vld [vmem:[%s1703_s4] ss:$0 sm:$0xff]  ;;  %p1323_p11 = scmp.ne.s32.totalorder %s1652_s13, %s1322_s20  ;;  %p1330_p1 = scmp.lt.s32.totalorder %s1328_s21, %s1322_s20 }
  0x1f   : > { %1083 = vmatprep.mubr.msk.f32.mxu0 %vm305_vm0, %v284_v19  ;;  %1234 = vmatprep.subr.bf16.mxu1 %v1233_v23 }
  0x20   : > { %1256 = vmatpush3.bf16.msra.mxu0 %v1253_v48  ;;  %p1324_p12 = pnand %p1323_p11, %p1467_p5  ;;  %p1331_p2 = por %p1330_p1, %p1329_p0 }
  0x21   : > { %1258 = vmatprep.subr.bf16.mxu0 %v1257_v51 }
  0x22   : > { %1084 = vmatmul.mubr.msk.f32.gmra.mrb[4].mxu0 %vm305_vm0, %v285_v22  ;;  %1236 = vmatpush3.bf16.msra.mxu1 %v1233_v23  ;;  %p1325_p13 = pneg %p1324_p12 }
  0x23   : > { %1086 = vmatprep.mubr.msk.f32.mxu0 %vm305_vm0, %v286_v24  ;;  %1238 = vmatprep.subr.bf16.mxu1 %v1237_v28 }
  0x24   : > { %1260 = vmatpush3.bf16.msra.mxu0 %v1257_v51  ;;  %v1277_v51 = vpack.c.bf16 %v714_v50, %v713_v49  ;;  %p1332_p3 = pnand %p1331_p2, %p1325_p13 }
  0x25   : > { %1262 = vmatprep.subr.bf16.mxu0 %v1261_v54 }
  0x26   : > { %1087 = vmatmul.mubr.msk.f32.gmra.mrb[6].mxu0 %vm305_vm0, %v287_v27  ;;  %1240 = vmatpush3.bf16.msra.mxu1 %v1237_v28 }
  0x27   : > { %1089 = vmatprep.mubr.msk.f32.mxu0 %vm305_vm0, %v288_v29  ;;  %1242 = vmatprep.subr.bf16.mxu1 %v1241_v33 }
  0x28   : > { %1264 = vmatpush3.bf16.msra.mxu0 %v1261_v54 }
  0x29   : > { %1266 = vmatprep.subr.bf16.mxu0 %v1265_v57 }
  0x2a   : > { %1090 = vmatmul.mubr.msk.f32.gmra.mrb[8].mxu0 %vm305_vm0, %v289_v32  ;;  %1244 = vmatpush3.bf16.msra.mxu1 %v1241_v33 }
  0x2b   : > { %1092 = vmatprep.mubr.msk.f32.mxu0 %vm305_vm0, %v290_v34  ;;  %1246 = vmatprep.subr.bf16.mxu1 %v1245_v42 }
  0x2c   : > { %1268 = vmatpush3.bf16.msra.mxu0 %v1265_v57 }
  0x2d   : > { %1270 = vmatprep.subr.bf16.mxu0 %v1269_v60 }
  0x2e   : > { %1093 = vmatmul.mubr.msk.f32.gmra.mrb[10].mxu0 %vm305_vm0, %v291_v35  ;;  %1248 = vmatpush3.bf16.msra.mxu1 %v1245_v42 }
  0x2f   : > { %1095 = vmatprep.mubr.msk.f32.mxu0 %vm305_vm0, %v292_v36 }
  0x30   : > { %1272 = vmatpush3.bf16.msra.mxu0 %v1269_v60 }
  0x31   : > { %1274 = vmatprep.subr.bf16.mxu0 %v1273_v63 }
  0x32   : > { %1096 = vmatmul.mubr.msk.f32.gmra.mrb[12].mxu0 %vm305_vm0, %v293_v37 }
  0x33   : > { %1098 = vmatprep.mubr.msk.f32.mxu0 %vm305_vm0, %v294_v38 }
  0x34   : > { %1276 = vmatpush3.bf16.msra.mxu0 %v1273_v63 }
  0x35   : > { %1278 = vmatprep.subr.bf16.mxu0 %v1277_v51 }
  0x36   : > { %1099 = vmatmul.mubr.msk.f32.gmra.mrb[14].mxu0 %vm305_vm0, %v295_v39 }
  0x38   : > { %1280 = vmatpush3.bf16.msra.mxu0 %v1277_v51 }
  0xed   : > { %v1079_v1 = vpop.f32.mrb[0].mxu0 }
  0xee   : > { %v426_v2 = vadd.f32 %v1079_v1, %v966_v0  ;;  %v420_v3 = vpop.f32.mrb[1].mxu0 }
  0xef   : > { %v421_v4 = vadd.f32 %v966_v0, %v420_v3 }
  0xf0   : > { %v500_v7 = vmax.f32 %v426_v2, 0.0 }
  0xf1   : > { %v1082_v5 = vpop.f32.mrb[2].mxu0  ;;  %v499_v6 = vmax.f32 %v421_v4, 0.0 }
  0xf2   : > { %v436_v8 = vadd.f32 %v1082_v5, %v966_v0  ;;  %v430_v9 = vpop.f32.mrb[3].mxu0 }
  0xf3   : > { %v431_v10 = vadd.f32 %v966_v0, %v430_v9  ;;  %1133 = vmatprep.mubr.f32.mxu1 %v499_v6 }
  0xf4   : > { %1134 = vmatmul.mubr.f32.vlgmr.msra.gmra.mrb[0].mxu1 %v500_v7  ;;  %v502_v13 = vmax.f32 %v436_v8, 0.0 }
  0xf5   : > { %v501_v11 = vmax.f32 %v431_v10, 0.0  ;;  %v1085_v12 = vpop.f32.mrb[4].mxu0 }
  0xf6   : > { %v446_v14 = vadd.f32 %v1085_v12, %v966_v0  ;;  %v440_v15 = vpop.f32.mrb[5].mxu0 }
  0xf7   : > { %v441_v16 = vadd.f32 %v966_v0, %v440_v15  ;;  %1136 = vmatprep.mubr.f32.mxu1 %v501_v11 }
  0xf8   : > { %1137 = vmatmul.mubr.f32.gmra.mrb[2].mxu1 %v502_v13  ;;  %v504_v19 = vmax.f32 %v446_v14, 0.0 }
  0xf9   : > { %v503_v17 = vmax.f32 %v441_v16, 0.0  ;;  %v1088_v18 = vpop.f32.mrb[6].mxu0 }
  0xfa   : > { %v456_v20 = vadd.f32 %v1088_v18, %v966_v0  ;;  %v450_v21 = vpop.f32.mrb[7].mxu0 }
  0xfb   : > { %v451_v22 = vadd.f32 %v966_v0, %v450_v21  ;;  %1139 = vmatprep.mubr.f32.mxu1 %v503_v17 }
  0xfc   : > { %1140 = vmatmul.mubr.f32.gmra.mrb[4].mxu1 %v504_v19  ;;  %v506_v25 = vmax.f32 %v456_v20, 0.0 }
  0xfd   : > { %v505_v23 = vmax.f32 %v451_v22, 0.0  ;;  %v1091_v24 = vpop.f32.mrb[8].mxu0 }
  0xfe   : > { %v466_v26 = vadd.f32 %v1091_v24, %v966_v0  ;;  %v460_v27 = vpop.f32.mrb[9].mxu0 }
  0xff   : > { %v461_v28 = vadd.f32 %v966_v0, %v460_v27  ;;  %1142 = vmatprep.mubr.f32.mxu1 %v505_v23 }
 0x100   : > { %1143 = vmatmul.mubr.f32.gmra.mrb[6].mxu1 %v506_v25  ;;  %v508_v31 = vmax.f32 %v466_v26, 0.0 }
 0x101   : > { %v507_v29 = vmax.f32 %v461_v28, 0.0  ;;  %v1094_v30 = vpop.f32.mrb[10].mxu0 }
 0x102   : > { %v476_v32 = vadd.f32 %v1094_v30, %v966_v0  ;;  %v470_v33 = vpop.f32.mrb[11].mxu0 }
 0x103   : > { %v471_v34 = vadd.f32 %v966_v0, %v470_v33  ;;  %1145 = vmatprep.mubr.f32.mxu1 %v507_v29 }
 0x104   : > { %1146 = vmatmul.mubr.f32.gmra.mrb[8].mxu1 %v508_v31  ;;  %v510_v37 = vmax.f32 %v476_v32, 0.0 }
 0x105   : > { %v509_v35 = vmax.f32 %v471_v34, 0.0  ;;  %v1097_v36 = vpop.f32.mrb[12].mxu0 }
 0x106   : > { %v486_v38 = vadd.f32 %v1097_v36, %v966_v0  ;;  %v480_v39 = vpop.f32.mrb[13].mxu0 }
 0x107   : > { %v481_v40 = vadd.f32 %v966_v0, %v480_v39  ;;  %1148 = vmatprep.mubr.f32.mxu1 %v509_v35 }
 0x108   : > { %1149 = vmatmul.mubr.f32.gmra.mrb[10].mxu1 %v510_v37  ;;  %v512_v43 = vmax.f32 %v486_v38, 0.0  ;;  %v984_v37 = vld [vmem:[%s1705_s6] ss:$0 sm:$0xff] }
 0x109   : > { %v511_v41 = vmax.f32 %v481_v40, 0.0  ;;  %v1100_v42 = vpop.f32.mrb[14].mxu0 }
 0x10a   : > { %v496_v44 = vadd.f32 %v1100_v42, %v966_v0  ;;  %v490_v45 = vpop.f32.mrb[15].mxu0 }
 0x10b   : > { %v491_v46 = vadd.f32 %v966_v0, %v490_v45  ;;  %1151 = vmatprep.mubr.f32.mxu1 %v511_v41 }
 0x10c   : > { %1152 = vmatmul.mubr.f32.gmra.mrb[12].mxu1 %v512_v43  ;;  %v514_v48 = vmax.f32 %v496_v44, 0.0 }
 0x10d   : > { %v513_v47 = vmax.f32 %v491_v46, 0.0 }
 0x10f   : > { %1154 = vmatprep.mubr.f32.mxu1 %v513_v47 }
 0x110   : > { %1155 = vmatmul.mubr.f32.gmra.mrb[14].mxu1 %v514_v48 }
 0x1c7   : > { %v1135_v53 = vpop.f32.mrb[0].mxu1 }
 0x1c8   : > { %v610_v54 = vadd.f32 %v1135_v53, %v983_v52  ;;  %v604_v55 = vpop.f32.mrb[1].mxu1 }
 0x1c9   : > { %v605_v56 = vadd.f32 %v983_v52, %v604_v55 }
 0x1ca   : > { %v684_v59 = vmax.f32 %v610_v54, 0.0 }
 0x1cb   : > { %v683_v57 = vmax.f32 %v605_v56, 0.0  ;;  %v1138_v58 = vpop.f32.mrb[2].mxu1 }
 0x1cc   : > { %v620_v60 = vadd.f32 %v1138_v58, %v983_v52  ;;  %v614_v61 = vpop.f32.mrb[3].mxu1 }
 0x1cd   : > { %v615_v62 = vadd.f32 %v983_v52, %v614_v61  ;;  %1189 = vmatprep.mubr.f32.mxu0 %v683_v57 }
 0x1ce   : > { %1190 = vmatmul.mubr.f32.vlgmr.msra.gmra.mrb[16].mxu0 %v684_v59  ;;  %v686_v1 = vmax.f32 %v620_v60, 0.0 }
 0x1cf   : > { %v685_v63 = vmax.f32 %v615_v62, 0.0  ;;  %v1141_v0 = vpop.f32.mrb[4].mxu1 }
 0x1d0   : > { %v630_v2 = vadd.f32 %v1141_v0, %v983_v52  ;;  %v624_v3 = vpop.f32.mrb[5].mxu1 }
 0x1d1   : > { %v625_v4 = vadd.f32 %v983_v52, %v624_v3  ;;  %1192 = vmatprep.mubr.f32.mxu0 %v685_v63 }
 0x1d2   : > { %1193 = vmatmul.mubr.f32.gmra.mrb[18].mxu0 %v686_v1  ;;  %v688_v7 = vmax.f32 %v630_v2, 0.0 }
 0x1d3   : > { %v687_v5 = vmax.f32 %v625_v4, 0.0  ;;  %v1144_v6 = vpop.f32.mrb[6].mxu1 }
 0x1d4   : > { %v640_v8 = vadd.f32 %v1144_v6, %v983_v52  ;;  %v634_v9 = vpop.f32.mrb[7].mxu1 }
 0x1d5   : > { %v635_v10 = vadd.f32 %v983_v52, %v634_v9  ;;  %1195 = vmatprep.mubr.f32.mxu0 %v687_v5 }
 0x1d6   : > { %1196 = vmatmul.mubr.f32.gmra.mrb[20].mxu0 %v688_v7  ;;  %v690_v13 = vmax.f32 %v640_v8, 0.0 }
 0x1d7   : > { %v689_v11 = vmax.f32 %v635_v10, 0.0  ;;  %v1147_v12 = vpop.f32.mrb[8].mxu1 }
 0x1d8   : > { %v650_v14 = vadd.f32 %v1147_v12, %v983_v52  ;;  %v644_v15 = vpop.f32.mrb[9].mxu1 }
 0x1d9   : > { %v645_v16 = vadd.f32 %v983_v52, %v644_v15  ;;  %1198 = vmatprep.mubr.f32.mxu0 %v689_v11 }
 0x1da   : > { %1199 = vmatmul.mubr.f32.gmra.mrb[22].mxu0 %v690_v13  ;;  %v692_v19 = vmax.f32 %v650_v14, 0.0 }
 0x1db   : > { %v691_v17 = vmax.f32 %v645_v16, 0.0  ;;  %v1150_v18 = vpop.f32.mrb[10].mxu1 }
 0x1dc   : > { %v660_v20 = vadd.f32 %v1150_v18, %v983_v52  ;;  %v654_v21 = vpop.f32.mrb[11].mxu1 }
 0x1dd   : > { %v655_v22 = vadd.f32 %v983_v52, %v654_v21  ;;  %1201 = vmatprep.mubr.f32.mxu0 %v691_v17 }
 0x1de   : > { %1202 = vmatmul.mubr.f32.gmra.mrb[24].mxu0 %v692_v19  ;;  %v694_v25 = vmax.f32 %v660_v20, 0.0 }
 0x1df   : > { %v693_v23 = vmax.f32 %v655_v22, 0.0  ;;  %v1153_v24 = vpop.f32.mrb[12].mxu1 }
 0x1e0   : > { %v670_v26 = vadd.f32 %v1153_v24, %v983_v52  ;;  %v664_v27 = vpop.f32.mrb[13].mxu1 }
 0x1e1   : > { %v665_v28 = vadd.f32 %v983_v52, %v664_v27  ;;  %1204 = vmatprep.mubr.f32.mxu0 %v693_v23 }
 0x1e2   : > { %1205 = vmatmul.mubr.f32.gmra.mrb[26].mxu0 %v694_v25  ;;  %v696_v31 = vmax.f32 %v670_v26, 0.0 }
 0x1e3   : > { %v695_v29 = vmax.f32 %v665_v28, 0.0  ;;  %v1156_v30 = vpop.f32.mrb[14].mxu1 }
 0x1e4   : > { %v680_v32 = vadd.f32 %v1156_v30, %v983_v52  ;;  %v674_v33 = vpop.f32.mrb[15].mxu1 }
 0x1e5   : > { %v675_v34 = vadd.f32 %v983_v52, %v674_v33  ;;  %1207 = vmatprep.mubr.f32.mxu0 %v695_v29 }
 0x1e6   : > { %1208 = vmatmul.mubr.f32.gmra.mrb[28].mxu0 %v696_v31  ;;  %v698_v36 = vmax.f32 %v680_v32, 0.0 }
 0x1e7   : > { %v697_v35 = vmax.f32 %v675_v34, 0.0 }
 0x1e9   : > { %1210 = vmatprep.mubr.f32.mxu0 %v697_v35 }
 0x1ea   : > { %1211 = vmatmul.mubr.f32.gmra.mrb[30].mxu0 %v698_v36 }
 0x2a1   : > { %v1191_v38 = vpop.f32.mrb[16].mxu0 }
 0x2a2   : > { %v794_v39 = vadd.f32 %v1191_v38, %v984_v37  ;;  %v788_v40 = vpop.f32.mrb[17].mxu0 }
 0x2a3   : > { %v789_v41 = vadd.f32 %v984_v37, %v788_v40 }
 0x2a4   : > { %868 = vst [vmem:[%s1629_s8 + $0x8] sm:$0xff] %v794_v39 }
 0x2a5   : > { %867 = vst [vmem:[%s1629_s8] sm:$0xff] %v789_v41  ;;  %v1194_v42 = vpop.f32.mrb[18].mxu0 }
 0x2a6   : > { %v804_v43 = vadd.f32 %v1194_v42, %v984_v37  ;;  %v798_v44 = vpop.f32.mrb[19].mxu0 }
 0x2a7   : > { %v799_v45 = vadd.f32 %v984_v37, %v798_v44 }
 0x2a8   : > { %870 = vst [vmem:[%s1629_s8 + $0x18] sm:$0xff] %v804_v43 }
 0x2a9   : > { %869 = vst [vmem:[%s1629_s8 + $0x10] sm:$0xff] %v799_v45  ;;  %v1197_v46 = vpop.f32.mrb[20].mxu0 }
 0x2aa   : > { %v814_v47 = vadd.f32 %v1197_v46, %v984_v37  ;;  %v808_v48 = vpop.f32.mrb[21].mxu0 }
 0x2ab   : > { %v809_v49 = vadd.f32 %v984_v37, %v808_v48 }
 0x2ac   : > { %872 = vst [vmem:[%s1629_s8 + $0x28] sm:$0xff] %v814_v47 }
 0x2ad   : > { %871 = vst [vmem:[%s1629_s8 + $0x20] sm:$0xff] %v809_v49  ;;  %v1200_v50 = vpop.f32.mrb[22].mxu0 }
 0x2ae   : > { %v824_v51 = vadd.f32 %v1200_v50, %v984_v37  ;;  %v818_v52 = vpop.f32.mrb[23].mxu0 }
 0x2af   : > { %v819_v53 = vadd.f32 %v984_v37, %v818_v52 }
 0x2b0   : > { %874 = vst [vmem:[%s1629_s8 + $0x38] sm:$0xff] %v824_v51 }
 0x2b1   : > { %873 = vst [vmem:[%s1629_s8 + $0x30] sm:$0xff] %v819_v53  ;;  %v1203_v54 = vpop.f32.mrb[24].mxu0 }
 0x2b2   : > { %v834_v55 = vadd.f32 %v1203_v54, %v984_v37  ;;  %v828_v56 = vpop.f32.mrb[25].mxu0 }
 0x2b3   : > { %v829_v57 = vadd.f32 %v984_v37, %v828_v56 }
 0x2b4   : > { %876 = vst [vmem:[%s1629_s8 + $0x48] sm:$0xff] %v834_v55 }
 0x2b5   : > { %875 = vst [vmem:[%s1629_s8 + $0x40] sm:$0xff] %v829_v57  ;;  %v1206_v58 = vpop.f32.mrb[26].mxu0 }
 0x2b6   : > { %v844_v59 = vadd.f32 %v1206_v58, %v984_v37  ;;  %v838_v60 = vpop.f32.mrb[27].mxu0 }
 0x2b7   : > { %v839_v61 = vadd.f32 %v984_v37, %v838_v60 }
 0x2b8   : > { %878 = vst [vmem:[%s1629_s8 + $0x58] sm:$0xff] %v844_v59 }
 0x2b9   : > { %877 = vst [vmem:[%s1629_s8 + $0x50] sm:$0xff] %v839_v61  ;;  %v1209_v62 = vpop.f32.mrb[28].mxu0 }
 0x2ba   : > { %v854_v63 = vadd.f32 %v1209_v62, %v984_v37  ;;  %v848_v0 = vpop.f32.mrb[29].mxu0 }
 0x2bb   : > { %v849_v1 = vadd.f32 %v984_v37, %v848_v0 }
 0x2bc   : > { %880 = vst [vmem:[%s1629_s8 + $0x68] sm:$0xff] %v854_v63 }
 0x2bd   : > { %879 = vst [vmem:[%s1629_s8 + $0x60] sm:$0xff] %v849_v1  ;;  %v1212_v2 = vpop.f32.mrb[30].mxu0 }
 0x2be   : > { %v864_v3 = vadd.f32 %v1212_v2, %v984_v37  ;;  %v858_v4 = vpop.f32.mrb[31].mxu0 }
 0x2bf   : > { %v859_v5 = vadd.f32 %v984_v37, %v858_v4 }
 0x2c0   : > { %882 = vst [vmem:[%s1629_s8 + $0x78] sm:$0xff] %v864_v3 }
 0x2c1   : > { %881 = vst [vmem:[%s1629_s8 + $0x70] sm:$0xff] %v859_v5 }
 0x2c2   : > { %1335 = shalt.err (!%p1332_p3)
}
 0x2c3   : > { %s1336_s22 = scalar_lea.hbm %s1650_s16, 2048  ;;  %s1340_s29 = scalar_lea.hbm %s1706_s7, 8192 }
 0x2c4   : > { %p1337_p4 = scmp.ne.s32.totalorder %s1650_s16, %s1336_s22  ;;  %p1341_p9 = scmp.lt.u32.totalorder %s1650_s16, %s1706_s7 }
 0x2c5   : > { %p1342_p10 = scmp.lt.u32.totalorder %s1340_s29, %s1336_s22  ;;  %p1344_p12 = scmp.lt.u32.totalorder %s1336_s22, %s1650_s16 }
 0x2c6   : > { %p1338_p7 = pnand %p1337_p4, %p1467_p5 }
 0x2c7   : > { %p1343_p11 = por %p1342_p10, %p1341_p9 }
 0x2c8   : > { %p1339_p8 = pneg %p1338_p7 }
 0x2c9   : > { %p1345_p13 = por %p1344_p12, %p1343_p11 }
 0x2cb   : > { %p1346_p0 = pnand %p1345_p13, %p1339_p8 }
 0x2cd   : > { %1349 = shalt.err (!%p1346_p0)
}
 0x2ce   : > { %s1387_s14 = smov 128   ;;  %s1388_s15 = smov 8  }
 0x2cf   : > { %1281 = dma.vmem_to_hbm [thread:$0]  (%p1467_p5), %s1652_s13, 2048, %s1650_s16, %s1658_s28, %s1387_s14, %s1387_s14, %s1388_s15  }
 0x2d0 PF: > { %p1287_p1 = scmp.ge.s32.totalorder %s1384_s27, 2  ;;  %s912_s20 = sand.u32 1, %s1372_s24  }
 0x2d1   : > { %s913_s18 = scalar_lea.sflag [#allocation3], %s912_s20 }
 0x2d2   : > { %p1284_p2 = pnand %p1287_p1, %p1471_p6 }
 0x2d4   : > { %1367 = dma.done.wait (!%p1284_p2), %s913_s18, 2048  }
 0x2d5   : > { %1369 = vsyncadd (!%p1284_p2), %s913_s18, 4294965248  ;;  %p17_p3 = scmp.ge.s32.totalorder %s1454_s30, 6   ;;  %s1709_s24 = smov %s1376_s25 }
 0x2d6   : > { %s1710_s25 = smov %s1380_s26  ;;  %s1711_s26 = smov %s1465_s10 }
 0x2d7   : > { %s1712_s27 = smov %s1454_s30  ;;  %19 = sbr.rel (!%p17_p3) target bundleno = 3 (0x3), region = 83 }
 0x2de   :  { %918 = vsyncpa [#allocation3], 1 }
 0x2df   :  { %920 = vsyncpa [#allocation3 + $0x1], 1 }

</bundles_post_ra>
